<compile_context>
chip_gen: v7x
topology: tpu7x:2x2x1
jax: 0.10.0
libtpu: 0.0.40
codegen_flags: <defaults>
</compile_context>

<pallas_src>
import jax
import jax.numpy as jnp
from jax.experimental import pallas as pl
from jax.experimental.pallas import tpu as pltpu

# ---------------- model hyper-params (small, consistent with the module) ----
CARD_INFO_DIM = 16
EFFECT_INFO_DIM = 8
D_MODEL = 32
MAX_EFFECTS_PER_CARD = 4
MAX_CARDS = 5
BATCH = 2

IN_DIM = CARD_INFO_DIM + MAX_EFFECTS_PER_CARD * EFFECT_INFO_DIM  # 48
PACK = 4                       # rows packed along lanes -> out width 4*32 = 128


def _round_up(x, m):
    return (x + m - 1) // m * m


# ---------------------------- Pallas kernel --------------------------------
def card_layer_kernel(x_ref, w_ref, b_ref, o_ref):
    """Fused matmul + bias + ReLU on lane-packed rows.

    x_ref : (TILE, PACK*IN_DIM)   = (TILE, 192)  packed card rows
    w_ref : (PACK*IN_DIM, PACK*D_MODEL) = (192, 128) block-diag fused weight
    b_ref : (1, PACK*D_MODEL)     = (1, 128)     tiled fused bias
    o_ref : (TILE, PACK*D_MODEL)  = (TILE, 128)  lane-dense output
    """
    out = jnp.dot(x_ref[...], w_ref[...],
                  preferred_element_type=jnp.float32) + b_ref[...]
    o_ref[...] = jnp.maximum(out, 0.0).astype(o_ref.dtype)


# ------------------------------ wrapper -------------------------------------
def fuse_params(params):
    """Fold all three linear layers into a single (IN_DIM, D_MODEL) matmul."""
    w_comb = jnp.concatenate(
        [params["w_enc"]] + [params["w_eff"]] * MAX_EFFECTS_PER_CARD, axis=0)
    w_fused = w_comb @ params["w_hid"]                              # (48, 32)
    b_fused = params["b_enc"] @ params["w_hid"] + params["b_hid"]   # (1, 32)
    return w_fused, b_fused


def card_layer_forward(cards_batch, params, tile_rows=1024):
    """cards_batch: (b, max_cards, IN_DIM) f32 -> (b, max_cards, D_MODEL)."""
    b, c, _ = cards_batch.shape
    n = b * c
    x2d = cards_batch.reshape(n, IN_DIM)

    # Tiny 48x32x32 fusion matmul + block-diag expansion on the XLA side;
    # the kernel sees one resident weight/bias and does zero in-kernel slicing.
    w_fused, b_fused = fuse_params(params)
    w_block = jnp.kron(jnp.eye(PACK, dtype=w_fused.dtype), w_fused)  # (192, 128)
    b_block = jnp.tile(b_fused, (1, PACK))                           # (1, 128)

    # Pack PACK consecutive card rows along lanes (contiguous, free reshape).
    n_pack = pl.cdiv(n, PACK)
    tile = min(tile_rows, _round_up(n_pack, 8))      # sublane multiple of 8
    n_pack_pad = _round_up(n_pack, tile)
    n_pad = n_pack_pad * PACK
    if n_pad != n:
        x2d = jnp.pad(x2d, ((0, n_pad - n), (0, 0)))
    x_packed = x2d.reshape(n_pack_pad, PACK * IN_DIM)

    out = pl.pallas_call(
        card_layer_kernel,
        out_shape=jax.ShapeDtypeStruct((n_pack_pad, PACK * D_MODEL), jnp.float32),
        grid=(n_pack_pad // tile,),
        in_specs=[
            pl.BlockSpec((tile, PACK * IN_DIM), lambda i: (i, 0)),          # x
            pl.BlockSpec((PACK * IN_DIM, PACK * D_MODEL), lambda i: (0, 0)),  # W
            pl.BlockSpec((1, PACK * D_MODEL), lambda i: (0, 0)),             # b
        ],
        out_specs=pl.BlockSpec((tile, PACK * D_MODEL), lambda i: (i, 0)),
        compiler_params=pltpu.CompilerParams(
            dimension_semantics=("parallel",)),       # megacore on v7x
    )(x_packed, w_block, b_block)

    # Unpack lanes back to per-card rows (contiguous reshape), drop padding.
    return out.reshape(n_pad, D_MODEL)[:n].reshape(b, c, D_MODEL)


# ------------------------- deterministic params ------------------------------
def init_params(key):
    k1, k2, k3, k4, k5 = jax.random.split(key, 5)

    def uniform(k, shape, fan_in):
        bound = 1.0 / jnp.sqrt(fan_in)
        return jax.random.uniform(k, shape, jnp.float32, -bound, bound)

    # stored pre-transposed: (in_features, out_features) so kernel does x @ W
    return {
        "w_enc": uniform(k1, (CARD_INFO_DIM, D_MODEL), CARD_INFO_DIM),
        "b_enc": uniform(k2, (1, D_MODEL), CARD_INFO_DIM),
        "w_eff": uniform(k3, (EFFECT_INFO_DIM, D_MODEL), EFFECT_INFO_DIM),
        "w_hid": uniform(k4, (D_MODEL, D_MODEL), D_MODEL),
        "b_hid": uniform(k5, (1, D_MODEL), D_MODEL),
    }


# --------------------------- pure-JAX reference ------------------------------
def card_layer_ref(cards_batch, p):
    """Mirrors the PyTorch module's op order exactly (un-fused)."""
    b, c, _ = cards_batch.shape
    card_info = cards_batch[:, :, :CARD_INFO_DIM]
    effect_info = cards_batch[:, :, CARD_INFO_DIM:].reshape(
        -1, MAX_EFFECTS_PER_CARD, EFFECT_INFO_DIM)
    h = card_info @ p["w_enc"] + p["b_enc"][0]
    eff = (effect_info @ p["w_eff"]).sum(axis=1).reshape(b, c, -1)
    h = h + eff
    return jax.nn.relu(h @ p["w_hid"] + p["b_hid"][0])


# --------------------------------- main --------------------------------------
if __name__ == "__main__":
    key = jax.random.PRNGKey(0)
    k_x, k_p = jax.random.split(key)

    cards_batch = jax.random.normal(
        k_x, (BATCH, MAX_CARDS, IN_DIM), dtype=jnp.float32)
    params = init_params(k_p)

    out = card_layer_forward(cards_batch, params)
    out = jax.block_until_ready(out)

    ref = card_layer_ref(cards_batch, params)
    assert out.shape == (BATCH, MAX_CARDS, D_MODEL)
    # Algebraic fusion reorders fp32 accumulation slightly; 1e-5 holds.
    assert jnp.allclose(out, ref, atol=1e-5, rtol=1e-5)

    print("KERNEL_OK")
</pallas_src>

<mosaic_0001>
module attributes {stable_mosaic.version = 11 : i64} {
  func.func @card_layer_kernel(%arg0: i32, %arg1: memref<8x192xf32, #tpu.memory_space<vmem>>, %arg2: memref<192x128xf32, #tpu.memory_space<vmem>>, %arg3: memref<1x128xf32, #tpu.memory_space<vmem>>, %arg4: memref<8x128xf32, #tpu.memory_space<vmem>>) attributes {dimension_semantics = [#tpu.dimension_semantics<parallel>], iteration_bounds = array<i64: 1>, scalar_prefetch = 0 : i64, scratch_operands = 0 : i64, tpu.core_type = #tpu.core_type<tc>, window_params = [{transform_indices = @transform_0, window_bounds = array<i64: 8, 192>}, {pipeline_mode = #tpu.pipeline_mode<synchronous>, transform_indices = @transform_1, window_bounds = array<i64: 192, 128>}, {pipeline_mode = #tpu.pipeline_mode<synchronous>, transform_indices = @transform_2, window_bounds = array<i64: 1, 128>}, {transform_indices = @transform_3, window_bounds = array<i64: 8, 128>}]} {
    %c0 = arith.constant 0 : index
    %c0_0 = arith.constant 0 : index
    %0 = vector.load %arg1[%c0, %c0_0] : memref<8x192xf32, #tpu.memory_space<vmem>>, vector<8x192xf32>
    %c0_1 = arith.constant 0 : index
    %c0_2 = arith.constant 0 : index
    %1 = vector.load %arg2[%c0_1, %c0_2] : memref<192x128xf32, #tpu.memory_space<vmem>>, vector<192x128xf32>
    %cst = arith.constant dense<0.000000e+00> : vector<8x128xf32>
    %2 = tpu.matmul %0, %1, %cst {dimension_numbers = #tpu.dot_dimension_numbers<[1], [0], [0], [1], [0, 0, 1, 1], [], []>} : vector<8x192xf32>, vector<192x128xf32>, vector<8x128xf32> -> vector<8x128xf32>
    %c0_3 = arith.constant 0 : index
    %c0_4 = arith.constant 0 : index
    %3 = vector.load %arg3[%c0_3, %c0_4] : memref<1x128xf32, #tpu.memory_space<vmem>>, vector<1x128xf32>
    %4 = vector.broadcast %3 : vector<1x128xf32> to vector<8x128xf32>
    %5 = arith.addf %2, %4 : vector<8x128xf32>
    %cst_5 = arith.constant 0.000000e+00 : f32
    %6 = vector.broadcast %cst_5 : f32 to vector<8x128xf32>
    %7 = arith.maximumf %5, %6 : vector<8x128xf32>
    %c0_6 = arith.constant 0 : index
    %c0_7 = arith.constant 0 : index
    %8 = vector.load %arg4[%c0_6, %c0_7] : memref<8x128xf32, #tpu.memory_space<vmem>>, vector<8x128xf32>
    tpu.vector_store %arg4[%c0_6, %c0_7], %7 {strides = array<i32>} : memref<8x128xf32, #tpu.memory_space<vmem>>, vector<8x128xf32>,
    return
  }
  func.func @transform_0(%arg0: i32) -> (i32, i32) {
    %c0_i32 = arith.constant 0 : i32
    %c0_i32_0 = arith.constant 0 : i32
    return %arg0, %c0_i32 : i32, i32
  }
  func.func @transform_1(%arg0: i32) -> (i32, i32) {
    %c0_i32 = arith.constant 0 : i32
    %c0_i32_0 = arith.constant 0 : i32
    %c0_i32_1 = arith.constant 0 : i32
    return %c0_i32, %c0_i32_0 : i32, i32
  }
  func.func @transform_2(%arg0: i32) -> (i32, i32) {
    %c0_i32 = arith.constant 0 : i32
    %c0_i32_0 = arith.constant 0 : i32
    %c0_i32_1 = arith.constant 0 : i32
    return %c0_i32, %c0_i32_0 : i32, i32
  }
  func.func @transform_3(%arg0: i32) -> (i32, i32) {
    %c0_i32 = arith.constant 0 : i32
    %c0_i32_0 = arith.constant 0 : i32
    return %arg0, %c0_i32 : i32, i32
  }
}

</mosaic_0001>

<bundles_post_ra>
// kernel: tpu_custom_call.1
= control target key start
LH: loop header
LB: loop body
LE: loop exit
PB: predicated region body
PF: predicated region fallthrough
CT: control target
= control target key end

     0   :  { %8 = vsyncpa [#allocation3], 0  ;;  %s354_s0 = inlined_call_operand.hbm [shape: f32[8,192], index: 0, kind: input, shape index: {}]   ;;  %s355_s1 = inlined_call_operand.hbm [shape: f32[192,128], index: 1, kind: input, shape index: {}]   ;;  %s356_s2 = inlined_call_operand.vmem [shape: f32[1,128], index: 2, kind: input, shape index: {}]   ;;  %s357_s3 = inlined_call_operand.hbm [shape: f32[8,128], index: 3, kind: output, shape index: {}]  }
   0x1   :  { %9 = vsyncpa [#allocation6], 0 }
   0x2   :  { %10 = vsyncpa [#allocation4], 0  ;;  %s282_s12 = smov [#allocation2]   ;;  %s283_s14 = smov [#allocation5]  }
   0x3   :  { %s17_s13 = sshll.u32 %s282_s12, 4  ;;  %s26_s15 = sshll.u32 %s283_s14, 4  ;;  %s18_s13 = int_to_ptr.vmem [resolvable:$true] %s17_s13  ;;  %s308_s15 = int_to_ptr.vmem [resolvable:$true] %s26_s15 }
   0x4   :  { %s210_s18 = scalar_lea.hbm %s354_s0, 256 }
   0x5   :  { %p211_p0 = scmp.ne.s32.totalorder %s354_s0, %s210_s18  ;;  %p214_p1 = scmp.lt.u32.totalorder %s210_s18, %s354_s0 }
   0x7   :  { %p216_p2 = pnand %p214_p1, %p211_p0 }
   0x9   :  { %219 = shalt.err (!%p216_p2)
}
   0xa   :  { %s220_s23 = scalar_lea.vmem %s18_s13, 256  ;;  %p225_p4 = scmp.lt.s32.totalorder %s18_s13, %s18_s13 }
   0xb   :  { %p221_p3 = scmp.ne.s32.totalorder %s18_s13, %s220_s23  ;;  %p226_p5 = scmp.lt.s32.totalorder %s220_s23, %s220_s23 }
   0xd   :  { %p227_p6 = por %p226_p5, %p225_p4 }
   0xf   :  { %p228_p7 = pnand %p227_p6, %p221_p3 }
  0x11   :  { %231 = shalt.err (!%p228_p7)
}
  0x12   :  { %20 = dma.hbm_to_vmem [thread:$0]  %s354_s0, 256, %s18_s13, [#allocation3]  }
  0x13   :  { %s232_s28 = scalar_lea.hbm %s355_s1, 3072 }
  0x14   :  { %p233_p8 = scmp.ne.s32.totalorder %s355_s1, %s232_s28  ;;  %p236_p9 = scmp.lt.u32.totalorder %s232_s28, %s355_s1 }
  0x16   :  { %p238_p10 = pnand %p236_p9, %p233_p8 }
  0x18   :  { %241 = shalt.err (!%p238_p10)
}
  0x19   :  { %s242_s6 = scalar_lea.vmem %s308_s15, 3072  ;;  %p247_p12 = scmp.lt.s32.totalorder %s308_s15, %s308_s15 }
  0x1a   :  { %p243_p11 = scmp.ne.s32.totalorder %s308_s15, %s242_s6  ;;  %p248_p13 = scmp.lt.s32.totalorder %s242_s6, %s242_s6 }
  0x1c   :  { %p249_p0 = por %p248_p13, %p247_p12 }
  0x1e   :  { %p250_p1 = pnand %p249_p0, %p243_p11 }
  0x20   :  { %253 = shalt.err (!%p250_p1)
}
  0x21   :  { %s284_s0 = smov 128   ;;  %s285_s7 = smov 8  }
  0x22   :  { %32 = dma.hbm_to_vmem [thread:$0]  %s355_s1, 3072, %s308_s15, [#allocation6], %s284_s0, %s284_s0, %s285_s7  }
  0x23   :  { %276 = dma.done.wait [#allocation3], 256  }
  0x24   :  { %277 = vsyncadd [#allocation3], 4294967040 }
  0x25   :  { %278 = dma.done.wait [#allocation6], 3072  }
  0x26   :  { %279 = vsyncadd [#allocation6], 4294964224  ;;  %v286_v0 = vmov 0.0|0.0   ;;  %v43_v1 = vld [vmem:[#allocation5] sm:$0xff]  ;;  %v44_v2 = vld [vmem:[#allocation5 + $0x8] sm:$0xff]  ;;  %vm74_vm0 = vcmask 523264  }
  0x27   :  { %168 = vmatprep.subr.bf16.mxu0 %v286_v0  ;;  %v45_v3 = vld [vmem:[#allocation5 + $0x10] sm:$0xff]  ;;  %v169_v4 = vpack.c.bf16 %v44_v2, %v43_v1  ;;  %v46_v5 = vld [vmem:[#allocation5 + $0x18] sm:$0xff]  ;;  %v47_v7 = vld [vmem:[#allocation5 + $0x20] sm:$0xff]  ;;  %s287_s11 = smov [#allocation7]  }
  0x28   :  { %v172_v6 = vpack.c.bf16 %v46_v5, %v45_v3  ;;  %v48_v8 = vld [vmem:[#allocation5 + $0x28] sm:$0xff]  ;;  %v49_v10 = vld [vmem:[#allocation5 + $0x30] sm:$0xff]  ;;  %v50_v11 = vld [vmem:[#allocation5 + $0x38] sm:$0xff]  ;;  %s156_s12 = sshll.u32 %s287_s11, 4  ;;  %s157_s12 = int_to_ptr.vmem [resolvable:$true] %s156_s12 }
  0x29   :  { %170 = vmatpush1.bf16.msra.mxu0 %v169_v4  ;;  %v175_v9 = vpack.c.bf16 %v48_v8, %v47_v7  ;;  %v42_v12 = vld [vmem:[#allocation2 + $0x8] sm:$0xff]  ;;  %v178_v13 = vpack.c.bf16 %v50_v11, %v49_v10  ;;  %v51_v14 = vld [vmem:[#allocation5 + $0x40] sm:$0xff]  ;;  %v52_v15 = vld [vmem:[#allocation5 + $0x48] sm:$0xff]  ;;  %s254_s13 = scalar_lea.vmem %s157_s12, 128  ;;  %p259_p3 = scmp.lt.s32.totalorder %s157_s12, %s157_s12 }
  0x2a   :  { %171 = vmatprep.subr.bf16.mxu0 %v286_v0  ;;  %167 = vmatprep.mubr.msk.f32.mxu0 %vm74_vm0, %v42_v12  ;;  %v181_v16 = vpack.c.bf16 %v52_v15, %v51_v14  ;;  %v53_v17 = vld [vmem:[#allocation5 + $0x50] sm:$0xff]  ;;  %v54_v18 = vld [vmem:[#allocation5 + $0x58] sm:$0xff]  ;;  %v55_v20 = vld [vmem:[#allocation5 + $0x60] sm:$0xff]  ;;  %p255_p2 = scmp.ne.s32.totalorder %s157_s12, %s254_s13  ;;  %p260_p4 = scmp.lt.s32.totalorder %s254_s13, %s254_s13 }
  0x2b   :  { %v184_v19 = vpack.c.bf16 %v54_v18, %v53_v17  ;;  %v56_v21 = vld [vmem:[#allocation5 + $0x68] sm:$0xff]  ;;  %v57_v23 = vld [vmem:[#allocation5 + $0x70] sm:$0xff]  ;;  %v58_v24 = vld [vmem:[#allocation5 + $0x78] sm:$0xff] }
  0x2c   :  { %v187_v22 = vpack.c.bf16 %v56_v21, %v55_v20  ;;  %v190_v25 = vpack.c.bf16 %v58_v24, %v57_v23  ;;  %v59_v26 = vld [vmem:[#allocation5 + $0x80] sm:$0xff]  ;;  %v60_v27 = vld [vmem:[#allocation5 + $0x88] sm:$0xff]  ;;  %v61_v29 = vld [vmem:[#allocation5 + $0x90] sm:$0xff]  ;;  %p261_p5 = por %p260_p4, %p259_p3 }
  0x2d   :  { %173 = vmatpush1.bf16.msra.mxu0 %v172_v6  ;;  %v193_v28 = vpack.c.bf16 %v60_v27, %v59_v26  ;;  %v62_v30 = vld [vmem:[#allocation5 + $0x98] sm:$0xff]  ;;  %v63_v32 = vld [vmem:[#allocation5 + $0xa0] sm:$0xff]  ;;  %v64_v33 = vld [vmem:[#allocation5 + $0xa8] sm:$0xff] }
  0x2e   :  { %174 = vmatprep.subr.bf16.mxu0 %v286_v0  ;;  %v196_v31 = vpack.c.bf16 %v62_v30, %v61_v29  ;;  %v199_v34 = vpack.c.bf16 %v64_v33, %v63_v32  ;;  %v65_v35 = vld [vmem:[#allocation5 + $0xb0] sm:$0xff]  ;;  %v66_v36 = vld [vmem:[#allocation5 + $0xb8] sm:$0xff]  ;;  %p262_p6 = pnand %p261_p5, %p255_p2 }
  0x2f   :  { %v202_v37 = vpack.c.bf16 %v66_v36, %v65_v35  ;;  %v41_v38 = vld [vmem:[#allocation2] sm:$0xff] }
  0x30   :  { %v166_v39 = vld [vmem:[%s356_s2] ss:$0 sm:$0xff] }
  0x31   :  { %176 = vmatpush1.bf16.msra.mxu0 %v175_v9 }
  0x32   :  { %177 = vmatprep.subr.bf16.mxu0 %v286_v0 }
  0x35   :  { %179 = vmatpush1.bf16.msra.mxu0 %v178_v13 }
  0x36   :  { %180 = vmatprep.subr.bf16.mxu0 %v286_v0 }
  0x39   :  { %182 = vmatpush1.bf16.msra.mxu0 %v181_v16 }
  0x3a   :  { %183 = vmatprep.subr.bf16.mxu0 %v286_v0 }
  0x3d   :  { %185 = vmatpush1.bf16.msra.mxu0 %v184_v19 }
  0x3e   :  { %186 = vmatprep.subr.bf16.mxu0 %v286_v0 }
  0x41   :  { %188 = vmatpush1.bf16.msra.mxu0 %v187_v22 }
  0x42   :  { %189 = vmatprep.subr.bf16.mxu0 %v286_v0 }
  0x45   :  { %191 = vmatpush1.bf16.msra.mxu0 %v190_v25 }
  0x46   :  { %192 = vmatprep.subr.bf16.mxu0 %v286_v0 }
  0x49   :  { %194 = vmatpush1.bf16.msra.mxu0 %v193_v28 }
  0x4a   :  { %195 = vmatprep.subr.bf16.mxu0 %v286_v0 }
  0x4d   :  { %197 = vmatpush1.bf16.msra.mxu0 %v196_v31 }
  0x4e   :  { %198 = vmatprep.subr.bf16.mxu0 %v286_v0 }
  0x51   :  { %200 = vmatpush1.bf16.msra.mxu0 %v199_v34 }
  0x52   :  { %201 = vmatprep.subr.bf16.mxu0 %v286_v0 }
  0x55   :  { %203 = vmatpush1.bf16.msra.mxu0 %v202_v37 }
  0x58   :  { %143 = vmatmul.mubr.f32.vlgmr.msra.gmra.mrb[0].mxu0 %v41_v38 }
 0x12b   :  { %v144_v40 = vpop.f32.mrb[0].mxu0 }
 0x12c   :  { %v145_v41 = vadd.f32 %v166_v39, %v144_v40  ;;  %v146_v42 = vpop.f32.mrb[1].mxu0 }
 0x12e   :  { %v148_v43 = vmax.f32 %v145_v41, 0.0 }
 0x130   :  { %149 = vst [vmem:[#allocation7] sm:$0xff] %v148_v43 }
 0x131   :  { %265 = shalt.err (!%p262_p6)
}
 0x132   :  { %s266_s16 = scalar_lea.hbm %s357_s3, 128 }
 0x133   :  { %p267_p7 = scmp.ne.s32.totalorder %s357_s3, %s266_s16  ;;  %p270_p8 = scmp.lt.u32.totalorder %s266_s16, %s357_s3 }
 0x135   :  { %p272_p9 = pnand %p270_p8, %p267_p7 }
 0x137   :  { %275 = shalt.err (!%p272_p9)
}
 0x138   :  { %159 = dma.vmem_to_hbm [thread:$0]  %s157_s12, 128, %s357_s3, [#allocation4]  }
 0x139   :  { %280 = dma.done.wait [#allocation4], 128  }
 0x13a   :  { %281 = vsyncadd [#allocation4], 4294967168 }
 0x13b   :  { %163 = vsyncpa [#allocation3], 1 }
 0x13c   :  { %164 = vsyncpa [#allocation6], 1 }
 0x13d   :  { %165 = vsyncpa [#allocation4], 1 }

</bundles_post_ra>
